<compile_context>
chip_gen: v6e
topology: v6e:2x2x1
jax: 0.10.0
libtpu: 0.0.40
codegen_flags: <defaults>
</compile_context>

<pallas_src>
import math
import functools

import jax
import jax.numpy as jnp
from jax import lax
from jax.experimental import pallas as pl
from jax.experimental.pallas import tpu as pltpu


# ---------------------------------------------------------------------------
# Tiling helper
# ---------------------------------------------------------------------------
def _pick_tile(dim, preferred, align):
    """Largest multiple of `align` that divides `dim` and is <= `preferred`,
    else the full dim (full-extent blocks are always legal)."""
    if dim <= preferred:
        return dim
    t = (preferred // align) * align
    while t >= align:
        if dim % t == 0:
            return t
        t -= align
    return dim


# ---------------------------------------------------------------------------
# Tiled linear (no bias):  (N, d_in) @ (d_in, d_out)
# ---------------------------------------------------------------------------
def _linear_kernel(x_ref, w_ref, o_ref):
    o_ref[...] = jnp.dot(
        x_ref[...], w_ref[...], preferred_element_type=jnp.float32
    ).astype(o_ref.dtype)


def linear_no_bias(x2d, w, *, block_m=512, block_n=1024, vmem_limit_bytes=None):
    """Row/column-tiled matmul; both grid axes 'parallel' (megacore-friendly)."""
    N, d_in = x2d.shape
    d_out = w.shape[1]
    bm = _pick_tile(N, block_m, 8)
    bn = _pick_tile(d_out, block_n, 128)
    cp = dict(dimension_semantics=("parallel", "parallel"))
    if vmem_limit_bytes is not None:
        cp["vmem_limit_bytes"] = vmem_limit_bytes
    return pl.pallas_call(
        _linear_kernel,
        grid=(N // bm, d_out // bn),
        in_specs=[
            pl.BlockSpec((bm, d_in), lambda i, j: (i, 0)),
            pl.BlockSpec((d_in, bn), lambda i, j: (0, j)),
        ],
        out_specs=pl.BlockSpec((bm, bn), lambda i, j: (i, j)),
        out_shape=jax.ShapeDtypeStruct((N, d_out), x2d.dtype),
        compiler_params=pltpu.CompilerParams(**cp),
    )(x2d, w)


# ---------------------------------------------------------------------------
# Fused QKV projection: x (N, d_model) @ W_qkv (d_model, 3*d_model)
#   -> q, k, v each (N, d_model)   (x read from HBM once, one wide MXU matmul)
# ---------------------------------------------------------------------------
def _qkv_proj_kernel(x_ref, w_ref, q_ref, k_ref, v_ref, *, d_model):
    y = jnp.dot(x_ref[...], w_ref[...], preferred_element_type=jnp.float32)
    q_ref[...] = y[:, :d_model].astype(q_ref.dtype)
    k_ref[...] = y[:, d_model:2 * d_model].astype(k_ref.dtype)
    v_ref[...] = y[:, 2 * d_model:].astype(v_ref.dtype)


def fused_qkv_projection(x2d, w_qkv, *, block_m=512, vmem_limit_bytes=None):
    N, d_model = x2d.shape
    assert w_qkv.shape == (d_model, 3 * d_model)
    bm = _pick_tile(N, block_m, 8)
    kernel = functools.partial(_qkv_proj_kernel, d_model=d_model)
    out = jax.ShapeDtypeStruct((N, d_model), x2d.dtype)
    o_spec = pl.BlockSpec((bm, d_model), lambda i: (i, 0))
    cp = dict(dimension_semantics=("parallel",))
    if vmem_limit_bytes is not None:
        cp["vmem_limit_bytes"] = vmem_limit_bytes
    return pl.pallas_call(
        kernel,
        grid=(N // bm,),
        in_specs=[
            pl.BlockSpec((bm, d_model), lambda i: (i, 0)),
            pl.BlockSpec((d_model, 3 * d_model), lambda i: (0, 0)),
        ],
        out_specs=(o_spec, o_spec, o_spec),
        out_shape=(out, out, out),
        compiler_params=pltpu.CompilerParams(**cp),
    )(x2d, w_qkv)


# ---------------------------------------------------------------------------
# Scaled dot-product attention: one grid step per batch, all heads per step
# ---------------------------------------------------------------------------
def _make_attention_kernel(*, h, d_k, has_mask, return_attn):
    def kernel(*refs):
        i = 0
        q_ref = refs[i]; i += 1
        k_ref = refs[i]; i += 1
        v_ref = refs[i]; i += 1
        mask_ref = None
        if has_mask:
            mask_ref = refs[i]; i += 1
        o_ref = refs[i]; i += 1
        attn_ref = refs[i] if return_attn else None

        q_all = q_ref[...]          # (S, d_model)
        k_all = k_ref[...]
        v_all = v_ref[...]
        if has_mask:
            masked = mask_ref[...] == 0   # (S, S) bool, shared by all heads

        outs = []
        for head in range(h):       # static unroll over heads
            lo = head * d_k
            qh = q_all[:, lo:lo + d_k]
            kh = k_all[:, lo:lo + d_k]
            vh = v_all[:, lo:lo + d_k]
            # Contract over d_k of both operands (no k.T relayout through XLU).
            # NOTE: the 1/sqrt(d_k) scale is folded into W_q at init.
            scores = lax.dot_general(
                qh, kh, dimension_numbers=(((1,), (1,)), ((), ())),
                preferred_element_type=jnp.float32)
            if has_mask:
                scores = jnp.where(masked, jnp.float32(-1e9), scores)
            m = jnp.max(scores, axis=-1, keepdims=True)
            e = jnp.exp(scores - m)
            denom = jnp.sum(e, axis=-1, keepdims=True)
            p = e * pl.reciprocal(denom, approx=True)
            if return_attn:
                attn_ref[head, :, :] = p.astype(attn_ref.dtype)
            outs.append(jnp.dot(p.astype(vh.dtype), vh,
                                preferred_element_type=jnp.float32))
        # Single lane-dense (S, d_model) output slab.
        o_ref[...] = jnp.concatenate(outs, axis=-1).astype(o_ref.dtype)

    return kernel


def attention_over_heads(q, k, v, mask, *, h, return_attn=False,
                         vmem_limit_bytes=None):
    """q, k, v: (B, S, d_model); mask: (B, S, S) int8 or None."""
    B, S, d_model = q.shape
    d_k = d_model // h
    has_mask = mask is not None
    kernel = _make_attention_kernel(h=h, d_k=d_k, has_mask=has_mask,
                                    return_attn=return_attn)

    bsd_spec = pl.BlockSpec((pl.Squeezed(), S, d_model), lambda b: (b, 0, 0))
    in_specs = [bsd_spec, bsd_spec, bsd_spec]
    args = [q, k, v]
    if has_mask:
        in_specs.append(pl.BlockSpec((pl.Squeezed(), S, S), lambda b: (b, 0, 0)))
        args.append(mask)

    out_spec = pl.BlockSpec((pl.Squeezed(), S, d_model), lambda b: (b, 0, 0))
    out_shape = jax.ShapeDtypeStruct((B, S, d_model), q.dtype)
    if return_attn:
        attn_spec = pl.BlockSpec((pl.Squeezed(), h, S, S),
                                 lambda b: (b, 0, 0, 0))
        out_specs = (out_spec, attn_spec)
        out_shapes = (out_shape, jax.ShapeDtypeStruct((B, h, S, S), jnp.float32))
    else:
        out_specs = out_spec
        out_shapes = out_shape

    cp = dict(dimension_semantics=("parallel",))
    if vmem_limit_bytes is not None:
        cp["vmem_limit_bytes"] = vmem_limit_bytes

    result = pl.pallas_call(
        kernel,
        grid=(B,),
        in_specs=in_specs,
        out_specs=out_specs,
        out_shape=out_shapes,
        compiler_params=pltpu.CompilerParams(**cp),
    )(*args)
    if return_attn:
        return result
    return result, None


# ---------------------------------------------------------------------------
# MultiHeadedAttention wrapper
# ---------------------------------------------------------------------------
def init_params(key, h, d_model):
    """Four Linear(d_model, d_model, bias=False) layers, PyTorch-style init.
    Weights stored transposed so kernels compute x @ W (== x @ W_pt.T)."""
    assert d_model % h == 0
    d_k = d_model // h
    bound = 1.0 / math.sqrt(d_model)
    keys = jax.random.split(key, 4)
    w_q, w_k, w_v, w_o = [
        jax.random.uniform(kk, (d_model, d_model), minval=-bound, maxval=bound,
                           dtype=jnp.float32)
        for kk in keys
    ]
    scale = 1.0 / math.sqrt(d_k)
    return {
        "w_q": w_q, "w_k": w_k, "w_v": w_v, "w_o": w_o,              # reference
        "w_q_scaled": w_q * scale,                                    # general path
        "w_qkv": jnp.concatenate([w_q * scale, w_k, w_v], axis=1),    # fused path
        "h": h, "d_model": d_model,
    }


def _cast_params(params, dtype):
    return {k: (v.astype(dtype) if isinstance(v, jnp.ndarray) else v)
            for k, v in params.items()}


def multi_headed_attention(params, query, key, value, mask=None, *,
                           return_attn=False, vmem_limit_bytes=None):
    """query/key/value: (B, S, d_model); mask: (B, S, S) or None.
    Returns output (B, S, d_model) (and attn (B, H, S, S) if return_attn)."""
    B, S, d_model = query.shape
    h = params["h"]
    N = B * S

    if (query is key) and (key is value):
        # SAKT self-attention fast path: one fused QKV projection.
        q3, k3, v3 = fused_qkv_projection(query.reshape(N, d_model),
                                          params["w_qkv"],
                                          vmem_limit_bytes=vmem_limit_bytes)
    else:
        q3 = linear_no_bias(query.reshape(N, d_model), params["w_q_scaled"])
        k3 = linear_no_bias(key.reshape(N, d_model), params["w_k"])
        v3 = linear_no_bias(value.reshape(N, d_model), params["w_v"])

    q3 = q3.reshape(B, S, d_model)
    k3 = k3.reshape(B, S, d_model)
    v3 = v3.reshape(B, S, d_model)

    mask_i8 = None if mask is None else mask.astype(jnp.int8)

    x, p_attn = attention_over_heads(q3, k3, v3, mask_i8, h=h,
                                     return_attn=return_attn,
                                     vmem_limit_bytes=vmem_limit_bytes)

    out = linear_no_bias(x.reshape(N, d_model), params["w_o"]).reshape(B, S, d_model)
    if return_attn:
        return out, p_attn
    return out


# ---------------------------------------------------------------------------
# Reference (pure JAX) for sanity checking
# ---------------------------------------------------------------------------
def reference(params, query, key, value, mask):
    B, S, d_model = query.shape
    h = params["h"]
    d_k = d_model // h

    def proj(x, w):
        return (x @ w).reshape(B, S, h, d_k).transpose(0, 2, 1, 3)

    q = proj(query, params["w_q"])
    k = proj(key, params["w_k"])
    v = proj(value, params["w_v"])
    scores = jnp.einsum("bhqd,bhkd->bhqk", q, k) / math.sqrt(d_k)
    if mask is not None:
        scores = jnp.where(mask[:, None, :, :] == 0, -1e9, scores)
    p = jax.nn.softmax(scores, axis=-1)
    x = jnp.einsum("bhqk,bhkd->bhqd", p, v)
    x = x.transpose(0, 2, 1, 3).reshape(B, S, d_model)
    return x @ params["w_o"], p


# ---------------------------------------------------------------------------
if __name__ == "__main__":
    B, S, d_model, H = 2, 8, 32, 4

    root = jax.random.PRNGKey(0)
    kp, kq, kk, kv = jax.random.split(root, 4)

    params = init_params(kp, H, d_model)
    query = jax.random.normal(kq, (B, S, d_model), dtype=jnp.float32)
    key = jax.random.normal(kk, (B, S, d_model), dtype=jnp.float32)
    value = jax.random.normal(kv, (B, S, d_model), dtype=jnp.float32)

    # Causal mask, broadcast over heads (mask.unsqueeze(1) in PyTorch).
    mask = jnp.tril(jnp.ones((S, S), dtype=jnp.int32))[None].repeat(B, axis=0)

    tol = dict(atol=2e-3, rtol=2e-3)   # approx reciprocal -> slightly loose

    # 1) General path (distinct q/k/v): three tiled projections.
    out, attn = multi_headed_attention(params, query, key, value, mask,
                                       return_attn=True)
    out = jax.block_until_ready(out)
    attn = jax.block_until_ready(attn)
    ref_out, ref_attn = reference(params, query, key, value, mask)
    assert jnp.allclose(out, ref_out, **tol)
    assert jnp.allclose(attn, ref_attn, **tol)

    # 2) SAKT self-attention fast path (query is key is value): fused QKV.
    out_sa, attn_sa = multi_headed_attention(params, query, query, query, mask,
                                             return_attn=True)
    out_sa = jax.block_until_ready(out_sa)
    ref_out_sa, ref_attn_sa = reference(params, query, query, query, mask)
    assert jnp.allclose(out_sa, ref_out_sa, **tol)
    assert jnp.allclose(attn_sa, ref_attn_sa, **tol)

    # 3) No mask, no p_attn output (lowest-bandwidth configuration).
    out_nm = multi_headed_attention(params, query, query, query, None)
    out_nm = jax.block_until_ready(out_nm)
    ref_out_nm, _ = reference(params, query, query, query, None)
    assert jnp.allclose(out_nm, ref_out_nm, **tol)

    # 4) bf16 inputs/weights with f32 accumulation (MXU-friendly precision).
    params_bf16 = _cast_params(params, jnp.bfloat16)
    q_bf16 = query.astype(jnp.bfloat16)
    out_bf16 = multi_headed_attention(params_bf16, q_bf16, q_bf16, q_bf16, mask)
    out_bf16 = jax.block_until_ready(out_bf16)
    assert jnp.allclose(out_bf16.astype(jnp.float32), ref_out_sa,
                        atol=0.15, rtol=0.15)

    print("KERNEL_OK")
</pallas_src>

<mosaic_0001>
module attributes {stable_mosaic.version = 11 : i64} {
  func.func @_linear_kernel(%arg0: i32, %arg1: i32, %arg2: memref<16x32xf32, #tpu.memory_space<vmem>>, %arg3: memref<32x32xf32, #tpu.memory_space<vmem>>, %arg4: memref<16x32xf32, #tpu.memory_space<vmem>>) attributes {dimension_semantics = [#tpu.dimension_semantics<parallel>, #tpu.dimension_semantics<parallel>], iteration_bounds = array<i64: 1, 1>, scalar_prefetch = 0 : i64, scratch_operands = 0 : i64, tpu.core_type = #tpu.core_type<tc>, window_params = [{transform_indices = @transform_0, window_bounds = array<i64: 16, 32>}, {transform_indices = @transform_1, window_bounds = array<i64: 32, 32>}, {transform_indices = @transform_2, window_bounds = array<i64: 16, 32>}]} {
    %c0 = arith.constant 0 : index
    %c0_0 = arith.constant 0 : index
    %0 = vector.load %arg2[%c0, %c0_0] : memref<16x32xf32, #tpu.memory_space<vmem>>, vector<16x32xf32>
    %c0_1 = arith.constant 0 : index
    %c0_2 = arith.constant 0 : index
    %1 = vector.load %arg3[%c0_1, %c0_2] : memref<32x32xf32, #tpu.memory_space<vmem>>, vector<32x32xf32>
    %cst = arith.constant dense<0.000000e+00> : vector<16x32xf32>
    %2 = tpu.matmul %0, %1, %cst {dimension_numbers = #tpu.dot_dimension_numbers<[1], [0], [0], [1], [0, 0, 1, 1], [], []>} : vector<16x32xf32>, vector<32x32xf32>, vector<16x32xf32> -> vector<16x32xf32>
    %c0_3 = arith.constant 0 : index
    %c0_4 = arith.constant 0 : index
    %3 = vector.load %arg4[%c0_3, %c0_4] : memref<16x32xf32, #tpu.memory_space<vmem>>, vector<16x32xf32>
    tpu.vector_store %arg4[%c0_3, %c0_4], %2 {strides = array<i32>} : memref<16x32xf32, #tpu.memory_space<vmem>>, vector<16x32xf32>,
    return
  }
  func.func @transform_0(%arg0: i32, %arg1: i32) -> (i32, i32) {
    %c0_i32 = arith.constant 0 : i32
    %c0_i32_0 = arith.constant 0 : i32
    return %arg0, %c0_i32 : i32, i32
  }
  func.func @transform_1(%arg0: i32, %arg1: i32) -> (i32, i32) {
    %c0_i32 = arith.constant 0 : i32
    %c0_i32_0 = arith.constant 0 : i32
    return %c0_i32, %arg1 : i32, i32
  }
  func.func @transform_2(%arg0: i32, %arg1: i32) -> (i32, i32) {
    %c0_i32 = arith.constant 0 : i32
    return %arg0, %arg1 : i32, i32
  }
}

</mosaic_0001>

<bundles_post_ra>
// kernel: tpu_custom_call.1
= control target key start
LH: loop header
LB: loop body
LE: loop exit
PB: predicated region body
PF: predicated region fallthrough
CT: control target
= control target key end

     0   :  { %7 = vsyncpa [#allocation3], 0  ;;  %s280_s0 = inlined_call_operand.hbm [shape: f32[16,32], index: 0, kind: input, shape index: {}]   ;;  %s281_s1 = inlined_call_operand.hbm [shape: f32[32,32], index: 1, kind: input, shape index: {}]   ;;  %s282_s2 = inlined_call_operand.hbm [shape: f32[16,32], index: 2, kind: output, shape index: {}]  }
   0x1   :  { %8 = vsyncpa [#allocation6], 0 }
   0x2   :  { %9 = vsyncpa [#allocation4], 0  ;;  %s238_s9 = smov [#allocation2]  }
   0x3   :  { %s15_s10 = sshll.u32 %s238_s9, 4  ;;  %s16_s10 = int_to_ptr.vmem [resolvable:$true] %s15_s10 }
   0x4   :  { %s180_s11 = scalar_lea.vmem %s16_s10, 256  ;;  %p185_p1 = scmp.lt.s32.totalorder %s16_s10, %s16_s10 }
   0x5   :  { %p181_p0 = scmp.ne.s32.totalorder %s16_s10, %s180_s11  ;;  %p186_p2 = scmp.lt.s32.totalorder %s180_s11, %s180_s11 }
   0x7   :  { %p187_p3 = por %p186_p2, %p185_p1 }
   0x9   :  { %p188_p4 = pnand %p187_p3, %p181_p0 }
   0xb   :  { %191 = shalt.err (!%p188_p4)
}
   0xc   :  { %s239_s12 = smov 128   ;;  %s240_s13 = smov 8  }
   0xd   :  { %21 = dma.hbm_to_vmem [thread:$0]  %s280_s0, 256, %s16_s10, [#allocation3], %s239_s12, %s239_s12, %s240_s13  }
   0xe   :  { %s241_s16 = smov [#allocation5]  }
   0xf   :  { %s27_s17 = sshll.u32 %s241_s16, 4  ;;  %s28_s17 = int_to_ptr.vmem [resolvable:$true] %s27_s17 }
  0x10   :  { %s200_s18 = scalar_lea.vmem %s28_s17, 512  ;;  %p205_p6 = scmp.lt.s32.totalorder %s28_s17, %s28_s17 }
  0x11   :  { %p201_p5 = scmp.ne.s32.totalorder %s28_s17, %s200_s18  ;;  %p206_p7 = scmp.lt.s32.totalorder %s200_s18, %s200_s18 }
  0x13   :  { %p207_p8 = por %p206_p7, %p205_p6 }
  0x15   :  { %p208_p9 = pnand %p207_p8, %p201_p5 }
  0x17   :  { %211 = shalt.err (!%p208_p9)
}
  0x18   :  { %33 = dma.hbm_to_vmem [thread:$0]  %s281_s1, 512, %s28_s17, [#allocation6], %s239_s12, %s239_s12, %s240_s13  }
  0x19   :  { %232 = dma.done.wait [#allocation3], 256  }
  0x1a   :  { %233 = vsyncadd [#allocation3], 4294967040 }
  0x1b   :  { %234 = dma.done.wait [#allocation6], 512  }
  0x1c   :  { %235 = vsyncadd [#allocation6], 4294966784  ;;  %vm46_vm0 = vcmask 261120   ;;  %v45_v0 = vld [vmem:[#allocation5 + $0x18] sm:$0xff]  ;;  %v44_v1 = vld [vmem:[#allocation5 + $0x10] sm:$0xff]  ;;  %s242_s0 = smov [#allocation7]  }
  0x1d   :  { %156 = vmatprep.subr.mxu0 %v45_v0  ;;  %v40_v2 = vld [vmem:[#allocation2] sm:$0xff]  ;;  %v43_v3 = vld [vmem:[#allocation5 + $0x8] sm:$0xff]  ;;  %v42_v4 = vld [vmem:[#allocation5] sm:$0xff]  ;;  %s135_s1 = sshll.u32 %s242_s0, 4  ;;  %s136_s1 = int_to_ptr.vmem [resolvable:$true] %s135_s1 }
  0x1e   :  { %157 = vmatpush3.msra.mxu0 %v45_v0  ;;  %164 = vmatprep.mubr.msk.f32.mxu0 %vm46_vm0, %v40_v2  ;;  %v41_v5 = vld [vmem:[#allocation2 + $0x8] sm:$0xff]  ;;  %s212_s21 = scalar_lea.vmem %s136_s1, 256  ;;  %p217_p11 = scmp.lt.s32.totalorder %s136_s1, %s136_s1 }
  0x1f   :  { %158 = vmatprep.subr.mxu0 %v44_v1  ;;  %p213_p10 = scmp.ne.s32.totalorder %s136_s1, %s212_s21  ;;  %p218_p12 = scmp.lt.s32.totalorder %s212_s21, %s212_s21 }
  0x20   :  { %159 = vmatpush3.msra.mxu0 %v44_v1 }
  0x21   :  { %160 = vmatprep.subr.mxu0 %v43_v3  ;;  %p219_p13 = por %p218_p12, %p217_p11 }
  0x22   :  { %161 = vmatpush3.msra.mxu0 %v43_v3 }
  0x23   :  { %162 = vmatprep.subr.mxu0 %v42_v4  ;;  %p220_p0 = pnand %p219_p13, %p213_p10 }
  0x24   :  { %163 = vmatpush3.msra.mxu0 %v42_v4 }
  0x25   :  { %165 = vmatmul.mubr.msk.f32.vlgmr.msra.gmra.mxu0 %vm46_vm0, %v41_v5 }
  0xe5   :  { %v166_v6 = vpop.f32.mrf.mxu0 }
  0xe6   :  { %129 = vst.msk [vmem:[#allocation7 + $0x8] sm:$0xff] %vm46_vm0, %v166_v6 }
  0xe7   :  { %v119_v7 = vpop.f32.mrf.mxu0 }
  0xe8   :  { %128 = vst.msk [vmem:[#allocation7] sm:$0xff] %vm46_vm0, %v119_v7 }
  0xe9   :  { %223 = shalt.err (!%p220_p0)
}
  0xea   :  { %141 = dma.vmem_to_hbm [thread:$0]  %s136_s1, 256, %s282_s2, [#allocation4], %s239_s12, %s239_s12, %s240_s13  }
  0xeb   :  { %236 = dma.done.wait [#allocation4], 256  }
  0xec   :  { %237 = vsyncadd [#allocation4], 4294967040 }
  0xed   :  { %145 = vsyncpa [#allocation3], 1 }
  0xee   :  { %146 = vsyncpa [#allocation6], 1 }
  0xef   :  { %147 = vsyncpa [#allocation4], 1 }

</bundles_post_ra>
